<compile_context>
chip_gen: v7x
topology: tpu7x:2x2x1
jax: 0.10.0
libtpu: 0.0.40
codegen_flags: <defaults>
</compile_context>

<pallas_src>
import functools

import jax
import jax.numpy as jnp
from jax.experimental import pallas as pl
from jax.experimental.pallas import tpu as pltpu


def _vmem_capacity_bytes():
    try:
        return int(pltpu.get_tpu_info().vmem_capacity_bytes)
    except Exception:
        return 64 << 20  # conservative: v7x per-TensorCore VMEM


# ----------------------------------------------------------------------------
# Single-pass kernel: pool + MLP + scale on a (bt, C, HW) resident tile.
# ----------------------------------------------------------------------------
def _one_pass_kernel(x_ref, w1t_ref, w2t_ref, o_ref, *, bt, hw):
    xb = x_ref[...]                                          # (bt, C, HW), native dtype

    # Adaptive max / avg pooling over the spatial (lane) axis.  The block is
    # the full HW extent, so Mosaic masks any internal lane padding for us.
    max_p = jnp.max(xb, axis=-1).astype(jnp.float32)         # (bt, C)
    avg_p = jnp.sum(xb, axis=-1, dtype=jnp.float32) * (1.0 / hw)

    # Fused shared MLP: one (2*bt, C) operand instead of two (bt, C) passes.
    p = jnp.concatenate([max_p, avg_p], axis=0)              # (2*bt, C) fp32
    h = jnp.maximum(
        jnp.dot(p, w1t_ref[...], preferred_element_type=jnp.float32), 0.0)
    y = jnp.dot(h, w2t_ref[...], preferred_element_type=jnp.float32)
    attn = jax.nn.sigmoid(y[:bt] + y[bt:])                   # (bt, C) fp32

    # Scale: keep the big tensor in its native dtype (one read + one write).
    o_ref[...] = (xb * attn.astype(xb.dtype)[:, :, None]).astype(o_ref.dtype)


# ----------------------------------------------------------------------------
# Two-pass fallback, pass 1: chunked max/sum over HW, MLP at the last chunk.
# ----------------------------------------------------------------------------
def _pool_mlp_kernel(x_ref, w1t_ref, w2t_ref, attn_ref, max_acc, sum_acc,
                     *, hw, hw_chunk):
    k = pl.program_id(1)
    nk = pl.num_programs(1)

    @pl.when(k == 0)
    def _():
        max_acc[...] = jnp.full_like(max_acc, -jnp.inf)
        sum_acc[...] = jnp.zeros_like(sum_acc)

    xb = x_ref[...]                                          # (1, C, hw_chunk)
    rem = hw % hw_chunk                                      # static

    def _accum(part_max, part_sum):
        max_acc[...] = jnp.maximum(max_acc[...], part_max)
        sum_acc[...] = sum_acc[...] + part_sum

    if rem == 0:
        _accum(jnp.max(xb, axis=-1).astype(jnp.float32),
               jnp.sum(xb, axis=-1, dtype=jnp.float32))
    else:
        # Only the final chunk overhangs the array: mask just that one so the
        # full-tile select does not run on every chunk.
        @pl.when(k < nk - 1)
        def _():
            _accum(jnp.max(xb, axis=-1).astype(jnp.float32),
                   jnp.sum(xb, axis=-1, dtype=jnp.float32))

        @pl.when(k == nk - 1)
        def _():
            lane = jax.lax.broadcasted_iota(jnp.int32, xb.shape, 2)
            mask = lane < rem
            xf = xb.astype(jnp.float32)
            neg = jnp.array(jnp.finfo(jnp.float32).min, jnp.float32)
            _accum(jnp.max(jnp.where(mask, xf, neg), axis=-1),
                   jnp.sum(jnp.where(mask, xf, 0.0), axis=-1))

    @pl.when(k == nk - 1)
    def _():
        max_p = max_acc[...]                                 # (1, C) fp32
        avg_p = sum_acc[...] * (1.0 / hw)
        p = jnp.concatenate([max_p, avg_p], axis=0)          # (2, C)
        h = jnp.maximum(
            jnp.dot(p, w1t_ref[...], preferred_element_type=jnp.float32), 0.0)
        y = jnp.dot(h, w2t_ref[...], preferred_element_type=jnp.float32)
        attn_ref[...] = jax.nn.sigmoid(y[:1] + y[1:])[:, None, :]   # (1, 1, C)


# ----------------------------------------------------------------------------
# Two-pass fallback, pass 2: elementwise scale.
# ----------------------------------------------------------------------------
def _scale_kernel(x_ref, attn_ref, o_ref):
    scale = attn_ref[...][:, 0, :, None]                     # (1, C, 1) fp32
    o_ref[...] = (x_ref[...] * scale.astype(x_ref.dtype)).astype(o_ref.dtype)


def _pick_hw_chunk(C, HW, itemsize, target_block_bytes):
    per_lane = max(C * itemsize, 1)
    chunk = max(128, (target_block_bytes // per_lane) // 128 * 128)
    if chunk >= HW:
        return int(HW)                                       # full dim: no masking needed
    return int(chunk)


def channel_attention(x, w1, w2, *, target_block_bytes=4 << 20,
                      min_grid_steps=4, force_two_pass=False, donate_x=False):
    """x: [B, C, H, W]. w1: [C//r, C], w2: [C, C//r] (nn.Linear, no bias)."""
    B, C, H, W = x.shape
    HW = H * W
    hidden = w1.shape[0]
    itemsize = jnp.dtype(x.dtype).itemsize

    x3 = x.reshape(B, C, HW)
    # Pre-transpose / pre-cast the tiny weights once in the wrapper.
    w1t = jnp.asarray(w1, jnp.float32).T                     # (C, hidden)
    w2t = jnp.asarray(w2, jnp.float32).T                     # (hidden, C)

    vmem_cap = _vmem_capacity_bytes()
    one_pass_budget = min(vmem_cap // 2, 48 << 20)
    elem_bytes = C * HW * itemsize                           # one (C, HW) slab
    weight_bytes = 2 * 2 * C * hidden * 4                    # 2 weights, double-buffered
    use_two_pass = force_two_pass or (4 * elem_bytes + (2 << 20) > one_pass_budget)
    aliases = {0: 0} if donate_x else {}

    if not use_two_pass:
        # ---- single pass: pool + MLP + scale on a resident (bt, C, HW) tile --
        bt = max(1, min(B, target_block_bytes // max(elem_bytes, 1)))
        depth = min(B, min_grid_steps)                       # keep grid deep (v7x: >=2)
        bt = min(bt, max(1, B // max(depth, 1)))
        grid = (pl.cdiv(B, bt),)

        need = 4 * bt * elem_bytes + weight_bytes + (2 << 20)
        vmem_limit = int(min(max(need, 16 << 20), int(0.7 * vmem_cap)))

        out = pl.pallas_call(
            functools.partial(_one_pass_kernel, bt=bt, hw=HW),
            out_shape=jax.ShapeDtypeStruct((B, C, HW), x.dtype),
            grid_spec=pltpu.PrefetchScalarGridSpec(
                num_scalar_prefetch=0,
                grid=grid,
                in_specs=[
                    pl.BlockSpec((bt, C, HW), lambda b: (b, 0, 0)),
                    pl.BlockSpec((C, hidden), lambda b: (0, 0)),
                    pl.BlockSpec((hidden, C), lambda b: (0, 0)),
                ],
                out_specs=pl.BlockSpec((bt, C, HW), lambda b: (b, 0, 0)),
            ),
            compiler_params=pltpu.CompilerParams(
                dimension_semantics=("parallel",),
                vmem_limit_bytes=vmem_limit,
            ),
            cost_estimate=pl.CostEstimate(
                flops=8 * B * C * hidden + 3 * B * C * HW,
                transcendentals=2 * B * C,
                bytes_accessed=2 * B * C * HW * itemsize,
            ),
            input_output_aliases=aliases,
        )(x3, w1t, w2t)
        return out.reshape(B, C, H, W)

    # ---- two-pass fallback: chunked-HW reduction, then elementwise scale ----
    hw_chunk = _pick_hw_chunk(C, HW, itemsize, target_block_bytes)
    n_chunks = pl.cdiv(HW, hw_chunk)

    need1 = 2 * C * hw_chunk * itemsize + weight_bytes + (2 << 20)
    vmem_limit1 = int(min(max(need1, 16 << 20), int(0.7 * vmem_cap)))
    attn = pl.pallas_call(
        functools.partial(_pool_mlp_kernel, hw=HW, hw_chunk=hw_chunk),
        out_shape=jax.ShapeDtypeStruct((B, 1, C), jnp.float32),
        grid_spec=pltpu.PrefetchScalarGridSpec(
            num_scalar_prefetch=0,
            grid=(B, n_chunks),
            in_specs=[
                pl.BlockSpec((1, C, hw_chunk), lambda b, k: (b, 0, k)),
                pl.BlockSpec((C, hidden), lambda b, k: (0, 0)),
                pl.BlockSpec((hidden, C), lambda b, k: (0, 0)),
            ],
            out_specs=pl.BlockSpec((1, 1, C), lambda b, k: (b, 0, 0)),
            scratch_shapes=[pltpu.VMEM((1, C), jnp.float32),
                            pltpu.VMEM((1, C), jnp.float32)],
        ),
        compiler_params=pltpu.CompilerParams(
            dimension_semantics=("parallel", "arbitrary"),
            vmem_limit_bytes=vmem_limit1,
        ),
        cost_estimate=pl.CostEstimate(
            flops=8 * B * C * hidden + 2 * B * C * HW,
            transcendentals=2 * B * C,
            bytes_accessed=B * C * HW * itemsize,
        ),
    )(x3, w1t, w2t)

    need2 = 4 * C * hw_chunk * itemsize + (2 << 20)
    vmem_limit2 = int(min(max(need2, 16 << 20), int(0.7 * vmem_cap)))
    out = pl.pallas_call(
        _scale_kernel,
        out_shape=jax.ShapeDtypeStruct((B, C, HW), x.dtype),
        grid_spec=pltpu.PrefetchScalarGridSpec(
            num_scalar_prefetch=0,
            grid=(B, n_chunks),
            in_specs=[
                pl.BlockSpec((1, C, hw_chunk), lambda b, k: (b, 0, k)),
                pl.BlockSpec((1, 1, C), lambda b, k: (b, 0, 0)),
            ],
            out_specs=pl.BlockSpec((1, C, hw_chunk), lambda b, k: (b, 0, k)),
        ),
        compiler_params=pltpu.CompilerParams(
            dimension_semantics=("parallel", "parallel"),
            vmem_limit_bytes=vmem_limit2,
        ),
        cost_estimate=pl.CostEstimate(
            flops=B * C * HW,
            transcendentals=0,
            bytes_accessed=2 * B * C * HW * itemsize,
        ),
        input_output_aliases=aliases,
    )(x3, attn)
    return out.reshape(B, C, H, W)


def channel_attention_ref(x, w1, w2):
    xf = x.astype(jnp.float32)
    max_p = jnp.max(xf, axis=(2, 3))                         # (B, C)
    avg_p = jnp.mean(xf, axis=(2, 3))                        # (B, C)

    def mlp(p):
        h = jnp.maximum(p @ w1.T, 0.0)
        return h @ w2.T

    attn = jax.nn.sigmoid(mlp(max_p) + mlp(avg_p))           # (B, C)
    return (xf * attn[:, :, None, None]).astype(x.dtype)


if __name__ == "__main__":
    key = jax.random.PRNGKey(0)
    kx, k1, k2, kx2 = jax.random.split(key, 4)

    B, C, ratio = 2, 32, 16
    hidden = C // ratio  # 2
    # nn.Linear weights without bias: [out_features, in_features].
    w1 = jax.random.normal(k1, (hidden, C), dtype=jnp.float32) * (1.0 / jnp.sqrt(C))
    w2 = jax.random.normal(k2, (C, hidden), dtype=jnp.float32) * (1.0 / jnp.sqrt(hidden))

    # 1) Single-pass path, lane-aligned spatial size.
    x = jax.random.normal(kx, (B, C, 16, 16), dtype=jnp.float32)
    out = jax.block_until_ready(channel_attention(x, w1, w2))
    ref = channel_attention_ref(x, w1, w2)
    assert jnp.allclose(out, ref, atol=1e-5, rtol=1e-5), "single-pass mismatch"

    # 2) Single-pass path, ragged spatial size (no wrapper pad/slice anymore).
    xr = jax.random.normal(kx2, (B, C, 15, 15), dtype=jnp.float32)
    outr = jax.block_until_ready(channel_attention(xr, w1, w2))
    refr = channel_attention_ref(xr, w1, w2)
    assert jnp.allclose(outr, refr, atol=1e-5, rtol=1e-5), "ragged single-pass mismatch"

    # 3) Two-pass (chunked HW) fallback, forced with a tiny block budget so the
    #    chunked reduction + masked-tail path is exercised at small shapes.
    out2 = jax.block_until_ready(
        channel_attention(xr, w1, w2, force_two_pass=True,
                          target_block_bytes=16 << 10))
    assert jnp.allclose(out2, refr, atol=1e-5, rtol=1e-5), "two-pass mismatch"

    print("KERNEL_OK")
</pallas_src>

<mosaic_0001>
module attributes {stable_mosaic.version = 11 : i64} {
  func.func @_one_pass_kernel(%arg0: i32, %arg1: memref<1x32x256xf32, #tpu.memory_space<vmem>>, %arg2: memref<32x2xf32, #tpu.memory_space<vmem>>, %arg3: memref<2x32xf32, #tpu.memory_space<vmem>>, %arg4: memref<1x32x256xf32, #tpu.memory_space<vmem>>) attributes {dimension_semantics = [#tpu.dimension_semantics<parallel>], iteration_bounds = array<i64: 2>, scalar_prefetch = 0 : i64, scratch_operands = 0 : i64, tpu.core_type = #tpu.core_type<tc>, window_params = [{transform_indices = @transform_0, window_bounds = array<i64: 1, 32, 256>}, {pipeline_mode = #tpu.pipeline_mode<synchronous>, transform_indices = @transform_1, window_bounds = array<i64: 32, 2>}, {pipeline_mode = #tpu.pipeline_mode<synchronous>, transform_indices = @transform_2, window_bounds = array<i64: 2, 32>}, {transform_indices = @transform_3, window_bounds = array<i64: 1, 32, 256>}]} {
    %c0 = arith.constant 0 : index
    %c0_0 = arith.constant 0 : index
    %c0_1 = arith.constant 0 : index
    %0 = vector.load %arg1[%c0, %c0_0, %c0_1] : memref<1x32x256xf32, #tpu.memory_space<vmem>>, vector<1x32x256xf32>
    %cst = arith.constant dense<0xFF800000> : vector<1x32xf32>
    %1 = vector.multi_reduction <maximumf>, %0, %cst [2] : vector<1x32x256xf32> to vector<1x32xf32>
    %cst_2 = arith.constant dense<0.000000e+00> : vector<1x32xf32>
    %2 = vector.multi_reduction <add>, %0, %cst_2 [2] : vector<1x32x256xf32> to vector<1x32xf32>
    %cst_3 = arith.constant 3.906250e-03 : f32
    %3 = vector.broadcast %cst_3 : f32 to vector<1x32xf32>
    %4 = arith.mulf %2, %3 : vector<1x32xf32>
    %5 = tpu.concatenate %1, %4 in 0 : vector<1x32xf32>, vector<1x32xf32> -> vector<2x32xf32>
    %c0_4 = arith.constant 0 : index
    %c0_5 = arith.constant 0 : index
    %6 = vector.load %arg2[%c0_4, %c0_5] : memref<32x2xf32, #tpu.memory_space<vmem>>, vector<32x2xf32>
    %cst_6 = arith.constant dense<0.000000e+00> : vector<2x2xf32>
    %7 = tpu.matmul %5, %6, %cst_6 {dimension_numbers = #tpu.dot_dimension_numbers<[1], [0], [0], [1], [0, 0, 1, 1], [], []>} : vector<2x32xf32>, vector<32x2xf32>, vector<2x2xf32> -> vector<2x2xf32>
    %cst_7 = arith.constant 0.000000e+00 : f32
    %8 = vector.broadcast %cst_7 : f32 to vector<2x2xf32>
    %9 = arith.maximumf %7, %8 : vector<2x2xf32>
    %c0_8 = arith.constant 0 : index
    %c0_9 = arith.constant 0 : index
    %10 = vector.load %arg3[%c0_8, %c0_9] : memref<2x32xf32, #tpu.memory_space<vmem>>, vector<2x32xf32>
    %cst_10 = arith.constant dense<0.000000e+00> : vector<2x32xf32>
    %11 = tpu.matmul %9, %10, %cst_10 {dimension_numbers = #tpu.dot_dimension_numbers<[1], [0], [0], [1], [0, 0, 1, 1], [], []>} : vector<2x2xf32>, vector<2x32xf32>, vector<2x32xf32> -> vector<2x32xf32>
    %12 = vector.extract_strided_slice %11 {offsets = [0, 0], sizes = [1, 32], strides = [1, 1]} : vector<2x32xf32> to vector<1x32xf32>
    %13 = vector.extract_strided_slice %11 {offsets = [1, 0], sizes = [1, 32], strides = [1, 1]} : vector<2x32xf32> to vector<1x32xf32>
    %14 = arith.addf %12, %13 : vector<1x32xf32>
    %15 = arith.negf %14 : vector<1x32xf32>
    %16 = math.exp %15 : vector<1x32xf32>
    %cst_11 = arith.constant 1.000000e+00 : f32
    %17 = vector.broadcast %cst_11 : f32 to vector<1x32xf32>
    %18 = arith.addf %17, %16 : vector<1x32xf32>
    %19 = arith.divf %17, %18 : vector<1x32xf32>
    %20 = vector.shape_cast %19 : vector<1x32xf32> to vector<1x32x1xf32>
    %21 = vector.broadcast %20 : vector<1x32x1xf32> to vector<1x32x256xf32>
    %22 = arith.mulf %0, %21 : vector<1x32x256xf32>
    %c0_12 = arith.constant 0 : index
    %c0_13 = arith.constant 0 : index
    %c0_14 = arith.constant 0 : index
    %23 = vector.load %arg4[%c0_12, %c0_13, %c0_14] : memref<1x32x256xf32, #tpu.memory_space<vmem>>, vector<1x32x256xf32>
    tpu.vector_store %arg4[%c0_12, %c0_13, %c0_14], %22 {strides = array<i32>} : memref<1x32x256xf32, #tpu.memory_space<vmem>>, vector<1x32x256xf32>,
    return
  }
  func.func @transform_0(%arg0: i32) -> (i32, i32, i32) {
    %c0_i32 = arith.constant 0 : i32
    %c0_i32_0 = arith.constant 0 : i32
    %c0_i32_1 = arith.constant 0 : i32
    return %arg0, %c0_i32, %c0_i32_0 : i32, i32, i32
  }
  func.func @transform_1(%arg0: i32) -> (i32, i32) {
    %c0_i32 = arith.constant 0 : i32
    %c0_i32_0 = arith.constant 0 : i32
    %c0_i32_1 = arith.constant 0 : i32
    return %c0_i32, %c0_i32_0 : i32, i32
  }
  func.func @transform_2(%arg0: i32) -> (i32, i32) {
    %c0_i32 = arith.constant 0 : i32
    %c0_i32_0 = arith.constant 0 : i32
    %c0_i32_1 = arith.constant 0 : i32
    return %c0_i32, %c0_i32_0 : i32, i32
  }
  func.func @transform_3(%arg0: i32) -> (i32, i32, i32) {
    %c0_i32 = arith.constant 0 : i32
    %c0_i32_0 = arith.constant 0 : i32
    %c0_i32_1 = arith.constant 0 : i32
    return %arg0, %c0_i32, %c0_i32_0 : i32, i32, i32
  }
}

</mosaic_0001>

<bundles_post_ra>
// kernel: tpu_custom_call.1
= control target key start
LH: loop header
LB: loop body
LE: loop exit
PB: predicated region body
PF: predicated region fallthrough
CT: control target
= control target key end

     0   :  { %8 = vsyncpa [#allocation3], 0  ;;  %s1027_s0 = inlined_call_operand.hbm [shape: f32[2,32,256], index: 0, kind: input, shape index: {}]   ;;  %s1028_s1 = inlined_call_operand.vmem [shape: f32[32,2], index: 1, kind: input, shape index: {}]   ;;  %s1029_s2 = inlined_call_operand.vmem [shape: f32[2,32], index: 2, kind: input, shape index: {}]   ;;  %s1030_s3 = inlined_call_operand.hbm [shape: f32[2,32,256], index: 3, kind: output, shape index: {}]  }
   0x1   :  { %10 = vsyncpa [#allocation3 + $0x1], 0 }
   0x2   :  { %11 = vsyncpa [#allocation4], 0 }
   0x3   :  { %13 = vsyncpa [#allocation4 + $0x1], 0  ;;  %s806_s12 = smov 0   ;;  %s808_s13 = smov 0  }
   0x4   :  { %s810_s14 = smov 0   ;;  %s812_s15 = smov 0  }
   0x5 LB: > { %s827_s16 = sadd.s32 4294967295, %s775_s15   ;;  %s573_s17 = sadd.s32 4294967294, %s775_s15   ;;  %s775_s15 = sphi %s812_s15, %s1043_s15   ;;  %s771_s14 = sphi %s810_s14, %s1042_s14   ;;  %s767_s13 = sphi %s808_s13, %s1041_s13   ;;  %s763_s12 = sphi %s806_s12, %s1040_s12  }
   0x6   : > { %s831_s18 = sadd.s32 1, %s775_s15   ;;  %s26_s19 = sadd.s32 1, %s771_s14 }
   0x7   : > { %s23_s20 = ssub.s32 %s775_s15, %s831_s18  ;;  %p33_p0 = scmp.ne.s32.totalorder %s771_s14, %s767_s13 }
   0x8   : > { %p24_p1 = scmp.eq.s32.totalorder %s23_s20, 0  ;;  %p34_p2 = scmp.eq.s32.totalorder %s775_s15, 0 }
   0x9   : > { %p39_p3 = scmp.ne.s32.totalorder %s767_s13, %s763_s12  ;;  %p40_p4 = scmp.eq.s32.totalorder %s827_s16, 0 }
   0xa   : > { %s843_s21 = scalar_select %p24_p1, %s771_s14, %s26_s19  }
   0xb   : > { %p845_p5 = por %p34_p2, %p33_p0  ;;  %p849_p6 = por %p40_p4, %p39_p3 }
   0xc   : > { %p105_p7 = scmp.eq.s32.totalorder %s827_s16, 1  ;;  %p111_p8 = scmp.eq.s32.totalorder %s573_s17, 1 }
   0xd   : > { %p634_p10 = scmp.lt.s32.totalorder %s775_s15, 2  ;;  %s137_s26 = sand.u32 1, %s771_s14  }
   0xe   : > { %p856_p11 = por %p105_p7, %p33_p0  ;;  %p860_p12 = por %p111_p8, %p39_p3 }
   0xf   : > { %s591_s27 = sshll.u32 %s775_s15, 10  ;;  %s576_s28 = sshll.u32 %s137_s26, 6 }
  0x10   : > { %s1034_s24 = scalar_select %p856_p11, 1, 0 }
  0x11   : > { %s1035_s25 = scalar_select %p860_p12, 1, 0 }
  0x12   : > { %s869_s4 = scalar_lea.hbm %s1027_s0, %s591_s27  ;;  %s141_s5 = scalar_lea.vmem [#allocation2], %s576_s28 }
  0x13   : > { %s148_s6 = sshll.u32 %s141_s5, 4  ;;  %p873_p13 = pnand %p634_p10, %p845_p5  ;;  %s877_s6 = int_to_ptr.vmem [resolvable:$true] %s148_s6 }
  0x14   : > { %s879_s8 = scalar_lea.sflag [#allocation3], %s137_s26  ;;  %s679_s9 = scalar_lea.hbm %s869_s4, 1024 }
  0x15   : > { %p680_p0 = scmp.ne.s32.totalorder %s869_s4, %s679_s9  ;;  %p681_p1 = pneg %p873_p13 }
  0x16   : > { %s684_s17 = scalar_lea.hbm %s1027_s0, 2048  ;;  %p685_p4 = scmp.lt.u32.totalorder %s869_s4, %s1027_s0 }
  0x17   : > { %p682_p2 = pnand %p681_p1, %p680_p0  ;;  %p686_p5 = scmp.lt.u32.totalorder %s684_s17, %s679_s9 }
  0x18   : > { %p688_p8 = scmp.lt.u32.totalorder %s679_s9, %s869_s4 }
  0x19   : > { %p683_p3 = pneg %p682_p2  ;;  %p687_p7 = por %p686_p5, %p685_p4 }
  0x1b   : > { %p689_p10 = por %p688_p8, %p687_p7 }
  0x1d   : > { %p690_p9 = pnand %p689_p10, %p683_p3 }
  0x1f   : > { %693 = shalt.err (!%p690_p9)
}
  0x20   : > { %s694_s22 = scalar_lea.vmem %s877_s6, 1024  ;;  %s777_s26 = smov [#allocation2]  }
  0x21   : > { %p695_p0 = scmp.ne.s32.totalorder %s877_s6, %s694_s22  ;;  %s699_s27 = sshll.u32 %s777_s26, 4  ;;  %s700_s27 = int_to_ptr.vmem [resolvable:$false] %s699_s27 }
  0x22   : > { %s701_s28 = scalar_lea.vmem %s700_s27, 2048  ;;  %p702_p11 = scmp.lt.s32.totalorder %s877_s6, %s700_s27 }
  0x23   : > { %p697_p2 = pnand %p695_p0, %p681_p1  ;;  %p703_p4 = scmp.lt.s32.totalorder %s701_s28, %s694_s22 }
  0x25   : > { %p698_p12 = pneg %p697_p2  ;;  %p704_p5 = por %p703_p4, %p702_p11 }
  0x27   : > { %p705_p7 = pnand %p704_p5, %p698_p12 }
  0x29   : > { %708 = shalt.err (!%p705_p7)
}
  0x2a   : > { %s778_s29 = smov 256   ;;  %s779_s30 = smov 16  }
  0x2b   : > { %629 = dma.hbm_to_vmem [thread:$0]  (!%p873_p13), %s869_s4, 1024, %s877_s6, %s879_s8, %s778_s29, %s778_s29, %s779_s30  }
  0x2c   : > { %p579_p9 = scmp.ge.s32.totalorder %s775_s15, 1  ;;  %p156_p1 = scmp.lt.s32.totalorder %s775_s15, 3 }
  0x2e   : > { %p157_p3 = pnand %p579_p9, %p156_p1 }
  0x2f   : > { %s910_s5 = sand.u32 (!%p157_p3), 1, %s767_s13  }
  0x30   : > { %160 = sbr.rel (%p157_p3) target bundleno = 817 (0x331), region = 32  ;;  %s580_s9 = sshll.u32 (!%p157_p3), %s910_s5, 6 }
  0x31   : > { %s163_s10 = scalar_lea.sflag (!%p157_p3), [#allocation3], %s910_s5  ;;  %s166_s11 = scalar_lea.vmem (!%p157_p3), [#allocation2], %s580_s9 }
  0x37   : > { %754 = dma.done.wait (%p849_p6), %s163_s10, 1024  }
  0x38   : > { %756 = vsyncadd (%p849_p6), %s163_s10, 4294966272  ;;  %v920_v0 = vld [vmem:[%s166_s11 + $0x20] sm:$0xff]  ;;  %v922_v1 = vld [vmem:[%s166_s11 + $0x28] sm:$0xff]  ;;  %v780_v19 = vmov 0.0|0.0   ;;  %vm781_vm0 = vmmov 0   ;;  %v782_v23 = vmov 0.0   ;;  %v229_v24 = vlaneseq }
  0x39   : > { %v924_v2 = vld [vmem:[%s166_s11] sm:$0xff]  ;;  %v215_v3 = vadd.f32 %v922_v1, %v920_v0  ;;  %v928_v4 = vld [vmem:[%s166_s11 + $0x8] sm:$0xff]  ;;  %v930_v5 = vld [vmem:[%s166_s11 + $0x10] sm:$0xff]  ;;  %v203_v15 = vmax.f32 %v920_v0, %v922_v1  ;;  %616 = vmatprep.subr.bf16.mxu0 %v780_v19  ;;  %608 = vmatprep.mubr.msk.f32.mxu0 %vm781_vm0, %v782_v23  ;;  %vm240_vm1 = vcmask 130112   ;;  %vm247_vm2 = vcmask 195712   ;;  %s188_s27 = scalar_lea.vmem [#allocation5], %s580_s9 }
  0x3a   : > { %v932_v6 = vld [vmem:[%s166_s11 + $0x18] sm:$0xff]  ;;  %v209_v7 = vadd.f32 %v928_v4, %v924_v2  ;;  %v197_v8 = vmax.f32 %v924_v2, %v928_v4  ;;  %v940_v10 = vld [vmem:[%s166_s11 + $0x30] sm:$0xff]  ;;  %v283_v16 = vld [vmem:[%s1028_s1] sm:$0xff]  ;;  %611 = vmatprep.subr.mxu1 %v782_v23  ;;  %613 = vmatprep.mubr.msk.f32.mxu1 %vm781_vm0, %v782_v23  ;;  %v230_v25 = vand.u32 127, %v229_v24  ;;  %v232_v29 = vshrl.u32 %v229_v24, 7  ;;  %s500_s28 = sshll.u32 %s188_s27, 4  ;;  %s976_s28 = int_to_ptr.vmem [resolvable:$true] %s500_s28 }
  0x3b   : > { %216 = vadd.xlane.f32.xlu1 %v215_v3  ;;  %v212_v9 = vadd.f32 %v932_v6, %v930_v5  ;;  %v942_v11 = vld [vmem:[%s166_s11 + $0x38] sm:$0xff]  ;;  %v200_v13 = vmax.f32 %v930_v5, %v932_v6  ;;  %v284_v17 = vld [vmem:[%s1028_s1 + $0x8] sm:$0xff]  ;;  %v285_v20 = vld [vmem:[%s1028_s1 + $0x10] sm:$0xff]  ;;  %vm254_vm3 = vcmask 261312   ;;  %vm281_vm4 = vcmask 1040384   ;;  %s592_s29 = sshll.u32 %s827_s16, 10 }
  0x3c   : > { %210 = vadd.xlane.f32.xlu0 %v209_v7  ;;  %v218_v12 = vadd.f32 %v942_v11, %v940_v10  ;;  %v206_v14 = vmax.f32 %v940_v10, %v942_v11  ;;  %v617_v18 = vpack.c.bf16 %v284_v17, %v283_v16  ;;  %v286_v21 = vld [vmem:[%s1028_s1 + $0x18] sm:$0xff]  ;;  %v235_v28 = vadd.s32 4294967288, %v230_v25  ;;  %v362_v61 = vld [vmem:[%s1029_s2] sm:$0x3]  ;;  %s981_s10 = scalar_lea.hbm %s1030_s3, %s592_s29  ;;  %s487_s16 = scalar_lea.sflag [#allocation4], %s910_s5 }
  0x3d   : > { %v620_v22 = vpack.c.bf16 %v286_v21, %v285_v20  ;;  %v249_v33 = vadd.s32 4294967272, %v230_v25  ;;  %v242_v34 = vadd.s32 4294967280, %v230_v25  ;;  %v233_v36 = vsub.s32 %v230_v25, %v232_v29  ;;  %s709_s11 = scalar_lea.vmem %s976_s28, 1024  ;;  %p1037_p11 = scmp.ne.s32.totalorder %s1034_s24, 0 }
  0x3e   : > { %618 = vmatpush3.bf16.msra.mxu0 %v617_v18  ;;  %v238_v31 = vsub.s32 %v235_v28, %v232_v29  ;;  %vm287_vm5 = vcmask 261120   ;;  %vm367_vm6 = vcmask 1041408   ;;  %vm363_vm7 = vcmask 15360   ;;  %p710_p6 = scmp.ne.s32.totalorder %s976_s28, %s709_s11  ;;  %s783_s23 = smov [#allocation5]  }
  0x3f   : > { %198 = vmax.xlane.f32.xlu1 %v197_v8  ;;  %619 = vmatprep.subr.bf16.mxu0 %v780_v19  ;;  %v252_v41 = vsub.s32 %v249_v33, %v232_v29  ;;  %v245_v43 = vsub.s32 %v242_v34, %v232_v29  ;;  %v453_v16 = vsub.s32 0, %v232_v29  ;;  %s713_s4 = sshll.u32 %s783_s23, 4  ;;  %s714_s4 = int_to_ptr.vmem [resolvable:$false] %s713_s4 }
  0x40   : > { %213 = vadd.xlane.f32.xlu0 %v212_v9  ;;  %612 = vmatpush3.msk.msra.mxu1 %vm367_vm6, %v362_v61  ;;  %p711_p12 = pnand %p710_p6, %p1037_p11  ;;  %s715_s6 = scalar_lea.vmem %s714_s4, 2048 }
  0x41   : > { %p716_p8 = scmp.lt.s32.totalorder %s976_s28, %s714_s4  ;;  %p717_p10 = scmp.lt.s32.totalorder %s715_s6, %s709_s11 }
  0x42   : > { %621 = vmatpush3.bf16.msra.mxu0 %v620_v22  ;;  %p712_p13 = pneg %p711_p12 }
  0x43   : > { %219 = vadd.xlane.f32.xlu1 %v218_v12  ;;  %p718_p0 = por %p717_p10, %p716_p8 }
  0x44   : > { %201 = vmax.xlane.f32.xlu0 %v200_v13 }
  0x45   : > { %p719_p2 = pnand %p718_p0, %p712_p13 }
  0x47   : > { %207 = vmax.xlane.f32.xlu1 %v206_v14 }
  0x48   : > { %204 = vmax.xlane.f32.xlu0 %v203_v15 }
  0xc8   : > { %v217_v26 = vpop.xlane.xlu1 %216 }
  0xc9   : > { %v211_v27 = vpop.xlane.xlu0 %210  ;;  %v223_v44 = vmul.f32 0.00390625, %v217_v26 }
  0xca   : > { %v221_v37 = vmul.f32 0.00390625, %v211_v27 }
  0xcb   : > { %v273_v53 = vrot.slane %v223_v44, %v245_v43 }
  0xcc   : > { %v199_v30 = vpop.xlane.xlu1 %198  ;;  %v264_v45 = vrot.slane %v221_v37, %v233_v36 }
  0xcd   : > { %v214_v32 = vpop.xlane.xlu0 %213  ;;  %v234_v49 = vrot.slane %v199_v30, %v233_v36 }
  0xce   : > { %v222_v35 = vmul.f32 0.00390625, %v214_v32 }
  0xd0   : > { %v220_v38 = vpop.xlane.xlu1 %219  ;;  %v268_v39 = vrot.slane %v222_v35, %v238_v31 }
  0xd1   : > { %v202_v40 = vpop.xlane.xlu0 %201  ;;  %v224_v42 = vmul.f32 0.00390625, %v220_v38 }
  0xd2   : > { %v239_v46 = vrot.slane %v202_v40, %v238_v31  ;;  %v269_v48 = vsel %vm240_vm1, %v268_v39, %v264_v45 }
  0xd3   : > { %v278_v50 = vrot.slane %v224_v42, %v252_v41  ;;  %v274_v57 = vsel %vm247_vm2, %v273_v53, %v269_v48 }
  0xd4   : > { %v208_v47 = vpop.xlane.xlu1 %207  ;;  %v241_v55 = vsel %vm240_vm1, %v239_v46, %v234_v49 }
  0xd5   : > { %v205_v51 = vpop.xlane.xlu0 %204  ;;  %v253_v52 = vrot.slane %v208_v47, %v252_v41  ;;  %v279_v59 = vsel %vm254_vm3, %v278_v50, %v274_v57 }
  0xd6   : > { %v246_v54 = vrot.slane %v205_v51, %v245_v43 }
  0xd8   : > { %v248_v56 = vsel %vm247_vm2, %v246_v54, %v241_v55 }
  0xd9   : > { %v255_v58 = vsel %vm254_vm3, %v253_v52, %v248_v56 }
  0xda   : > { %v282_v60 = vsel %vm281_vm4, %v255_v58, %v279_v59 }
  0xdb   : > { %609 = vmatmul.mubr.msk.f32.vlgmr.msra.gmra.mrb[0].mxu0 %vm287_vm5, %v282_v60 }
 0x1ae   : > { %v357_v62 = vpop.f32.mrb[0].mxu0 }
 0x1af   : > { %v361_v63 = vmax.f32 %v357_v62, 0.0  ;;  %v610_v3 = vpop.f32.mrb[1].mxu0 }
 0x1b1   : > { %614 = vmatmul.mubr.msk.f32.vlgmr.msra.gmra.mrb[0].mxu1 %vm363_vm7, %v361_v63 }
 0x284   : > { %v437_v7 = vpop.f32.mrb[0].mxu1 }
 0x285   : > { %v442_v8 = vrot.slane %v437_v7, 1  ;;  %v615_v9 = vpop.f32.mrb[1].mxu1 }
 0x287   : > { %v444_v12 = vadd.f32 %v442_v8, %v437_v7 }
 0x289   : > { %v585_v13 = vmul.f32 -1.442695, %v444_v12 }
 0x28b   : > { %675 = vpow2.f32 %v585_v13 }
 0x295   : > { %v676_v14 = vpop.eup %675 }
 0x296   : > { %v448_v15 = vadd.f32 1.0, %v676_v14 }
 0x298   : > { %677 = vrcp.f32 %v448_v15 }
 0x2a2   : > { %v678_v17 = vpop.eup %677 }
 0x2a3   : > { %v454_v18 = vrot.slane %v678_v17, %v453_v16 }
 0x2a5   : > { %460 = vbcast.lane.b32.xlu1 %v454_v18, 264  ;;  %456 = vbcast.lane.b32.xlu0 %v454_v18, 256 }
 0x2a9   : > { %464 = vbcast.lane.b32.xlu1 %v454_v18, 272 }
 0x2ad   : > { %468 = vbcast.lane.b32.xlu1 %v454_v18, 280 }
 0x317   : > { %v461_v19 = vpop.permute.xlu1 %460  ;;  %v457_v20 = vpop.permute.xlu0 %456 }
 0x318   : > { %v472_v21 = vmul.f32 %v461_v19, %v930_v5  ;;  %v473_v22 = vmul.f32 %v461_v19, %v932_v6  ;;  %v470_v23 = vmul.f32 %v457_v20, %v924_v2  ;;  %v471_v24 = vmul.f32 %v457_v20, %v928_v4 }
 0x31a   : > { %480 = vst [vmem:[%s188_s27 + $0x10] sm:$0xff] %v472_v21  ;;  %481 = vst [vmem:[%s188_s27 + $0x18] sm:$0xff] %v473_v22 }
 0x31b   : > { %478 = vst [vmem:[%s188_s27] sm:$0xff] %v470_v23  ;;  %479 = vst [vmem:[%s188_s27 + $0x8] sm:$0xff] %v471_v24  ;;  %v465_v25 = vpop.permute.xlu1 %464 }
 0x31c   : > { %v474_v26 = vmul.f32 %v465_v25, %v920_v0  ;;  %v475_v5 = vmul.f32 %v465_v25, %v922_v1 }
 0x31e   : > { %482 = vst [vmem:[%s188_s27 + $0x20] sm:$0xff] %v474_v26  ;;  %483 = vst [vmem:[%s188_s27 + $0x28] sm:$0xff] %v475_v5 }
 0x31f   : > { %v469_v2 = vpop.permute.xlu1 %468 }
 0x320   : > { %v476_v4 = vmul.f32 %v469_v2, %v940_v10  ;;  %v477_v0 = vmul.f32 %v469_v2, %v942_v11 }
 0x322   : > { %484 = vst [vmem:[%s188_s27 + $0x30] sm:$0xff] %v476_v4  ;;  %485 = vst [vmem:[%s188_s27 + $0x38] sm:$0xff] %v477_v0 }
 0x323   : > { %722 = shalt.err (!%p719_p2)
}
 0x324   : > { %s723_s7 = scalar_lea.hbm %s981_s10, 1024  ;;  %s727_s19 = scalar_lea.hbm %s1030_s3, 2048 }
 0x325   : > { %p724_p4 = scmp.ne.s32.totalorder %s981_s10, %s723_s7  ;;  %p728_p9 = scmp.lt.u32.totalorder %s981_s10, %s1030_s3 }
 0x326   : > { %p729_p1 = scmp.lt.u32.totalorder %s727_s19, %s723_s7  ;;  %p731_p6 = scmp.lt.u32.totalorder %s723_s7, %s981_s10 }
 0x327   : > { %p725_p5 = pnand %p724_p4, %p1037_p11 }
 0x328   : > { %p730_p3 = por %p729_p1, %p728_p9 }
 0x329   : > { %p726_p7 = pneg %p725_p5 }
 0x32a   : > { %p732_p12 = por %p731_p6, %p730_p3 }
 0x32c   : > { %p733_p13 = pnand %p732_p12, %p726_p7 }
 0x32e   : > { %736 = shalt.err (!%p733_p13)
}
 0x32f   : > { %s784_s26 = smov 256   ;;  %s785_s27 = smov 16  }
 0x330   : > { %624 = dma.vmem_to_hbm [thread:$0]  (%p1037_p11), %s976_s28, 1024, %s981_s10, %s487_s16, %s784_s26, %s784_s26, %s785_s27  }
 0x331 PF: > { %s515_s29 = sand.u32 1, %s763_s12   ;;  %p1038_p8 = scmp.ne.s32.totalorder %s1035_s25, 0 }
 0x332   : > { %p1039_p10 = scmp.ge.s32.totalorder %s775_s15, 2  ;;  %s516_s30 = scalar_lea.sflag [#allocation4], %s515_s29 }
 0x334   : > { %p631_p0 = pnand %p1039_p10, %p1038_p8 }
 0x336   : > { %758 = dma.done.wait (!%p631_p0), %s516_s30, 1024  }
 0x337   : > { %760 = vsyncadd (!%p631_p0), %s516_s30, 4294966272  ;;  %p16_p2 = scmp.ge.s32.totalorder %s831_s18, 4   ;;  %s1040_s12 = smov %s767_s13 }
 0x338   : > { %s1041_s13 = smov %s771_s14  ;;  %s1042_s14 = smov %s843_s21 }
 0x339   : > { %s1043_s15 = smov %s831_s18  ;;  %18 = sbr.rel (!%p16_p2) target bundleno = 5 (0x5), region = 77 }
 0x340   :  { %521 = vsyncpa [#allocation3], 1 }
 0x341   :  { %523 = vsyncpa [#allocation3 + $0x1], 1 }
 0x342   :  { %524 = vsyncpa [#allocation4], 1 }
 0x343   :  { %526 = vsyncpa [#allocation4 + $0x1], 1 }

</bundles_post_ra>
